<compile_context>
chip_gen: v6e
topology: v6e:2x2x1
jax: 0.10.0
libtpu: 0.0.40
codegen_flags: <defaults>
</compile_context>

<pallas_src>
import jax
import jax.numpy as jnp
from jax.experimental import pallas as pl
from jax.experimental.pallas import tpu as pltpu


def _h_swish(x):
    # x * relu6(x + 3) / 6
    return x * jnp.clip(x + 3.0, 0.0, 6.0) * (1.0 / 6.0)


def coordatt_kernel(x_ref, w1_ref, b1_ref, wh_ref, bh_ref, ww_ref, bw_ref,
                    ph_ref, pw_ref, eh_ref, ew_ref, out_ref):
    x = x_ref[...]                                   # (Nb, C, HW)  lane-dense
    Nb = x.shape[0]
    HW, H = ph_ref.shape
    W = pw_ref.shape[1]

    # ---- coordinate pooling (AdaptiveAvgPool) as matmuls on the idle MXU ----
    # x_h[c, h] = mean_w x[c, h*W+w] ; x_w[c, w] = mean_h x[c, h*W+w]
    ph = jnp.broadcast_to(ph_ref[...][None], (Nb, HW, H))
    pw = jnp.broadcast_to(pw_ref[...][None], (Nb, HW, W))
    x_h = jnp.einsum("nck,nkh->nch", x, ph,
                     preferred_element_type=jnp.float32)          # (Nb, C, H)
    x_w = jnp.einsum("nck,nkw->ncw", x, pw,
                     preferred_element_type=jnp.float32)          # (Nb, C, W)

    # ---- conv1 (BN pre-folded on host) + h_swish, per branch (no concat) ----
    w1 = jnp.broadcast_to(w1_ref[...][None], (Nb,) + w1_ref.shape)  # (Nb,mip,C)
    b1 = b1_ref[...][None]                                          # (1,mip,1)
    yh = _h_swish(jnp.einsum("nmc,nch->nmh", w1, x_h,
                             preferred_element_type=jnp.float32) + b1)
    yw = _h_swish(jnp.einsum("nmc,ncw->nmw", w1, x_w,
                             preferred_element_type=jnp.float32) + b1)

    # ---- conv_h / conv_w (1x1) + sigmoid -> per-axis gates ----
    wh = jnp.broadcast_to(wh_ref[...][None], (Nb,) + wh_ref.shape)  # (Nb,C,mip)
    ww = jnp.broadcast_to(ww_ref[...][None], (Nb,) + ww_ref.shape)
    a_h = jax.nn.sigmoid(jnp.einsum("ncm,nmh->nch", wh, yh,
                                    preferred_element_type=jnp.float32)
                         + bh_ref[...][None])                       # (Nb,C,H)
    a_w = jax.nn.sigmoid(jnp.einsum("ncm,nmw->ncw", ww, yw,
                                    preferred_element_type=jnp.float32)
                         + bw_ref[...][None])                       # (Nb,C,W)

    # ---- expand gates onto the flat spatial axis (0/1 matrices, MXU) and
    # ---- apply: out = identity * a_h * a_w  (single fused VPU multiply) ----
    eh = jnp.broadcast_to(eh_ref[...][None], (Nb, H, HW))
    ew = jnp.broadcast_to(ew_ref[...][None], (Nb, W, HW))
    g_h = jnp.einsum("nch,nhk->nck", a_h, eh,
                     preferred_element_type=jnp.float32)            # (Nb,C,HW)
    g_w = jnp.einsum("ncw,nwk->nck", a_w, ew,
                     preferred_element_type=jnp.float32)            # (Nb,C,HW)

    out_ref[...] = (x * g_h * g_w).astype(out_ref.dtype)


def _ceil_to(v, m):
    return -(-v // m) * m


def _padded_bytes_2d(shape):
    # VMEM padding for a 2-D f32 operand: sublanes -> mult of 8, lanes -> 128.
    r, c = shape
    return _ceil_to(r, 8) * _ceil_to(c, 128) * 4


def coord_att(x, params, *, io_vmem_budget_bytes=16 << 20):
    """x: (N, C, H, W) float32; params: dict of weights (see init_params)."""
    N, C, H, W = x.shape
    HW = H * W
    w1, b1 = params["w1"], params["b1"]
    wh, bh = params["wh"], params["bh"]
    ww, bw = params["ww"], params["bw"]
    mip = w1.shape[0]

    # ---- fold eval-mode BN into conv1 (host side, free) ----
    eps = 1e-5
    scale = params["bn_gamma"] / jnp.sqrt(params["bn_var"] + eps)
    shift = params["bn_beta"] - params["bn_mean"] * scale
    w1f = scale[:, None] * w1                          # (mip, C)
    b1f = (scale * b1 + shift).reshape(mip, 1)         # (mip, 1) column bias
    bh_c = bh.reshape(C, 1)
    bw_c = bw.reshape(C, 1)

    # ---- constant pooling / expansion matrices (host side) ----
    eye_h = jnp.eye(H, dtype=jnp.float32)
    eye_w = jnp.eye(W, dtype=jnp.float32)
    P_h = jnp.repeat(eye_h, W, axis=0) / float(W)      # (HW, H): mean over W
    P_w = jnp.tile(eye_w, (H, 1)) / float(H)           # (HW, W): mean over H
    E_h = jnp.repeat(eye_h, W, axis=1)                 # (H, HW): h-gate expand
    E_w = jnp.tile(eye_w, (1, H))                      # (W, HW): w-gate expand

    # ---- lane-dense I/O layout: flatten spatial dims (free, row-major) ----
    x_flat = x.reshape(N, C, HW)

    # ---- pick Nb images per grid step (amortize per-step overhead) ----
    img_bytes = _ceil_to(C, 8) * _ceil_to(HW, 128) * 4     # padded VMEM bytes
    divisors = [d for d in range(1, N + 1) if N % d == 0]
    fitting = [d for d in divisors
               if 4 * d * img_bytes <= io_vmem_budget_bytes] or [1]
    # keep >= 2 grid steps when possible: v7x has 2 TensorCores per chip
    multi_step = [d for d in fitting if N // d >= 2]
    Nb = max(multi_step) if multi_step else max(fitting)
    grid_n = N // Nb

    # ---- explicit VMEM budget (v5e default scoped = 16 MiB; v7x phys = 64) --
    const_bytes = sum(_padded_bytes_2d(a.shape)
                      for a in (w1f, b1f, wh, bh_c, ww, bw_c, P_h, P_w, E_h, E_w))
    vmem_limit = int(min(max(8 * Nb * img_bytes + 2 * const_bytes + (4 << 20),
                             16 << 20),
                         56 << 20))

    full2d = lambda n: (0, 0)  # weights / constants: one resident block

    out_flat = pl.pallas_call(
        coordatt_kernel,
        out_shape=jax.ShapeDtypeStruct((N, C, HW), x.dtype),
        grid_spec=pltpu.PrefetchScalarGridSpec(
            num_scalar_prefetch=0,
            grid=(grid_n,),
            in_specs=[
                pl.BlockSpec((Nb, C, HW), lambda n: (n, 0, 0)),   # x (lane-dense)
                pl.BlockSpec((mip, C), full2d),                   # w1 (BN folded)
                pl.BlockSpec((mip, 1), full2d),                   # b1 (column)
                pl.BlockSpec((C, mip), full2d),                   # wh
                pl.BlockSpec((C, 1), full2d),                     # bh (column)
                pl.BlockSpec((C, mip), full2d),                   # ww
                pl.BlockSpec((C, 1), full2d),                     # bw (column)
                pl.BlockSpec((HW, H), full2d),                    # pool-H matrix
                pl.BlockSpec((HW, W), full2d),                    # pool-W matrix
                pl.BlockSpec((H, HW), full2d),                    # expand-H matrix
                pl.BlockSpec((W, HW), full2d),                    # expand-W matrix
            ],
            out_specs=pl.BlockSpec((Nb, C, HW), lambda n: (n, 0, 0)),
        ),
        compiler_params=pltpu.CompilerParams(
            dimension_semantics=("parallel",),
            vmem_limit_bytes=vmem_limit),
    )(x_flat, w1f, b1f, wh, bh_c, ww, bw_c, P_h, P_w, E_h, E_w)

    return out_flat.reshape(N, C, H, W)


def init_params(key, inp, reduction=32):
    """Deterministic synthetic parameters matching CoordAtt.__init__ shapes."""
    mip = max(8, inp // reduction)
    keys = jax.random.split(key, 8)
    p = {
        # conv1: Conv2d(inp, mip, 1) -> weight (mip, inp), bias (mip,)
        "w1": jax.random.normal(keys[0], (mip, inp), jnp.float32) * 0.2,
        "b1": jax.random.normal(keys[1], (mip,), jnp.float32) * 0.1,
        # bn1: BatchNorm2d(mip) running stats + affine (eval mode)
        "bn_gamma": 1.0 + 0.1 * jax.random.normal(keys[2], (mip,), jnp.float32),
        "bn_beta": 0.1 * jax.random.normal(keys[3], (mip,), jnp.float32),
        "bn_mean": 0.05 * jax.random.normal(keys[4], (mip,), jnp.float32),
        "bn_var": jnp.abs(1.0 + 0.1 * jax.random.normal(keys[5], (mip,), jnp.float32)),
        # conv_h / conv_w: Conv2d(mip, inp, 1)
        "wh": jax.random.normal(keys[6], (inp, mip), jnp.float32) * 0.2,
        "bh": jnp.linspace(-0.1, 0.1, inp, dtype=jnp.float32),
        "ww": jax.random.normal(keys[7], (inp, mip), jnp.float32) * 0.2,
        "bw": jnp.linspace(0.1, -0.1, inp, dtype=jnp.float32),
    }
    return p


def coord_att_ref(x, params):
    """Pure-JAX reference of the PyTorch forward (eval-mode BN)."""
    eps = 1e-5
    w1, b1 = params["w1"], params["b1"]
    wh, bh = params["wh"], params["bh"]
    ww, bw = params["ww"], params["bw"]
    scale = params["bn_gamma"] / jnp.sqrt(params["bn_var"] + eps)
    shift = params["bn_beta"] - params["bn_mean"] * scale

    N, C, H, W = x.shape
    x_h = jnp.mean(x, axis=3)                    # (N, C, H)
    x_w = jnp.mean(x, axis=2)                    # (N, C, W)
    y = jnp.concatenate([x_h, x_w], axis=2)      # (N, C, H+W)
    y = jnp.einsum("mc,ncl->nml", w1, y) + b1[None, :, None]
    y = y * scale[None, :, None] + shift[None, :, None]
    y = y * jnp.clip(y + 3.0, 0.0, 6.0) / 6.0
    yh, yw = y[:, :, :H], y[:, :, H:]
    a_h = jax.nn.sigmoid(jnp.einsum("cm,nml->ncl", wh, yh) + bh[None, :, None])
    a_w = jax.nn.sigmoid(jnp.einsum("cm,nml->ncl", ww, yw) + bw[None, :, None])
    return x * a_h[:, :, :, None] * a_w[:, :, None, :]


if __name__ == "__main__":
    N, C, H, W = 2, 4, 16, 16
    key = jax.random.PRNGKey(0)
    kx, kp = jax.random.split(key)
    x = jax.random.normal(kx, (N, C, H, W), jnp.float32)
    params = init_params(kp, inp=C, reduction=32)

    out = coord_att(x, params)
    out = jax.block_until_ready(out)

    ref = coord_att_ref(x, params)
    assert out.shape == (N, C, H, W)
    assert jnp.allclose(out, ref, atol=1e-5, rtol=1e-5), "mismatch vs reference"
    print("KERNEL_OK")
</pallas_src>

<mosaic_0001>
module attributes {stable_mosaic.version = 11 : i64} {
  func.func @coordatt_kernel(%arg0: i32, %arg1: memref<1x4x256xf32, #tpu.memory_space<vmem>>, %arg2: memref<8x4xf32, #tpu.memory_space<vmem>>, %arg3: memref<8x1xf32, #tpu.memory_space<vmem>>, %arg4: memref<4x8xf32, #tpu.memory_space<vmem>>, %arg5: memref<4x1xf32, #tpu.memory_space<vmem>>, %arg6: memref<4x8xf32, #tpu.memory_space<vmem>>, %arg7: memref<4x1xf32, #tpu.memory_space<vmem>>, %arg8: memref<256x16xf32, #tpu.memory_space<vmem>>, %arg9: memref<256x16xf32, #tpu.memory_space<vmem>>, %arg10: memref<16x256xf32, #tpu.memory_space<vmem>>, %arg11: memref<16x256xf32, #tpu.memory_space<vmem>>, %arg12: memref<1x4x256xf32, #tpu.memory_space<vmem>>) attributes {dimension_semantics = [#tpu.dimension_semantics<parallel>], iteration_bounds = array<i64: 2>, scalar_prefetch = 0 : i64, scratch_operands = 0 : i64, tpu.core_type = #tpu.core_type<tc>, window_params = [{transform_indices = @transform_0, window_bounds = array<i64: 1, 4, 256>}, {pipeline_mode = #tpu.pipeline_mode<synchronous>, transform_indices = @transform_1, window_bounds = array<i64: 8, 4>}, {pipeline_mode = #tpu.pipeline_mode<synchronous>, transform_indices = @transform_2, window_bounds = array<i64: 8, 1>}, {pipeline_mode = #tpu.pipeline_mode<synchronous>, transform_indices = @transform_3, window_bounds = array<i64: 4, 8>}, {pipeline_mode = #tpu.pipeline_mode<synchronous>, transform_indices = @transform_4, window_bounds = array<i64: 4, 1>}, {pipeline_mode = #tpu.pipeline_mode<synchronous>, transform_indices = @transform_5, window_bounds = array<i64: 4, 8>}, {pipeline_mode = #tpu.pipeline_mode<synchronous>, transform_indices = @transform_6, window_bounds = array<i64: 4, 1>}, {pipeline_mode = #tpu.pipeline_mode<synchronous>, transform_indices = @transform_7, window_bounds = array<i64: 256, 16>}, {pipeline_mode = #tpu.pipeline_mode<synchronous>, transform_indices = @transform_8, window_bounds = array<i64: 256, 16>}, {pipeline_mode = #tpu.pipeline_mode<synchronous>, transform_indices = @transform_9, window_bounds = array<i64: 16, 256>}, {pipeline_mode = #tpu.pipeline_mode<synchronous>, transform_indices = @transform_10, window_bounds = array<i64: 16, 256>}, {transform_indices = @transform_11, window_bounds = array<i64: 1, 4, 256>}]} {
    %c0 = arith.constant 0 : index
    %c0_0 = arith.constant 0 : index
    %c0_1 = arith.constant 0 : index
    %0 = vector.load %arg1[%c0, %c0_0, %c0_1] : memref<1x4x256xf32, #tpu.memory_space<vmem>>, vector<1x4x256xf32>
    %c0_2 = arith.constant 0 : index
    %c0_3 = arith.constant 0 : index
    %1 = vector.load %arg8[%c0_2, %c0_3] : memref<256x16xf32, #tpu.memory_space<vmem>>, vector<256x16xf32>
    %2 = vector.shape_cast %1 : vector<256x16xf32> to vector<1x256x16xf32>
    %c0_4 = arith.constant 0 : index
    %c0_5 = arith.constant 0 : index
    %3 = vector.load %arg9[%c0_4, %c0_5] : memref<256x16xf32, #tpu.memory_space<vmem>>, vector<256x16xf32>
    %4 = vector.shape_cast %3 : vector<256x16xf32> to vector<1x256x16xf32>
    "tpu.trace_start"() <{level = 10 : i32, message = "nck,nkh->nch"}> : () -> ()
    %cst = arith.constant dense<0.000000e+00> : vector<1x4x16xf32>
    %5 = tpu.matmul %0, %2, %cst {dimension_numbers = #tpu.dot_dimension_numbers<[2], [1], [1], [2], [0, 0, 0, 1, 1, 2], [0], [0]>} : vector<1x4x256xf32>, vector<1x256x16xf32>, vector<1x4x16xf32> -> vector<1x4x16xf32>
    "tpu.trace_stop"() : () -> ()
    "tpu.trace_start"() <{level = 10 : i32, message = "nck,nkw->ncw"}> : () -> ()
    %cst_6 = arith.constant dense<0.000000e+00> : vector<1x4x16xf32>
    %6 = tpu.matmul %0, %4, %cst_6 {dimension_numbers = #tpu.dot_dimension_numbers<[2], [1], [1], [2], [0, 0, 0, 1, 1, 2], [0], [0]>} : vector<1x4x256xf32>, vector<1x256x16xf32>, vector<1x4x16xf32> -> vector<1x4x16xf32>
    "tpu.trace_stop"() : () -> ()
    %c0_7 = arith.constant 0 : index
    %c0_8 = arith.constant 0 : index
    %7 = vector.load %arg2[%c0_7, %c0_8] : memref<8x4xf32, #tpu.memory_space<vmem>>, vector<8x4xf32>
    %8 = vector.shape_cast %7 : vector<8x4xf32> to vector<1x8x4xf32>
    %c0_9 = arith.constant 0 : index
    %c0_10 = arith.constant 0 : index
    %9 = vector.load %arg3[%c0_9, %c0_10] : memref<8x1xf32, #tpu.memory_space<vmem>>, vector<8x1xf32>
    %10 = vector.shape_cast %9 : vector<8x1xf32> to vector<1x8x1xf32>
    "tpu.trace_start"() <{level = 10 : i32, message = "nmc,nch->nmh"}> : () -> ()
    %cst_11 = arith.constant dense<0.000000e+00> : vector<1x8x16xf32>
    %11 = tpu.matmul %8, %5, %cst_11 {dimension_numbers = #tpu.dot_dimension_numbers<[2], [1], [1], [2], [0, 0, 0, 1, 1, 2], [0], [0]>} : vector<1x8x4xf32>, vector<1x4x16xf32>, vector<1x8x16xf32> -> vector<1x8x16xf32>
    "tpu.trace_stop"() : () -> ()
    %12 = vector.broadcast %10 : vector<1x8x1xf32> to vector<1x8x16xf32>
    %13 = arith.addf %11, %12 : vector<1x8x16xf32>
    %cst_12 = arith.constant 3.000000e+00 : f32
    %14 = vector.broadcast %cst_12 : f32 to vector<1x8x16xf32>
    %15 = arith.addf %13, %14 : vector<1x8x16xf32>
    %cst_13 = arith.constant 0.000000e+00 : f32
    %cst_14 = arith.constant 6.000000e+00 : f32
    %16 = vector.broadcast %cst_13 : f32 to vector<1x8x16xf32>
    %17 = arith.maximumf %16, %15 : vector<1x8x16xf32>
    %18 = vector.broadcast %cst_14 : f32 to vector<1x8x16xf32>
    %19 = arith.minimumf %18, %17 : vector<1x8x16xf32>
    %20 = arith.mulf %13, %19 : vector<1x8x16xf32>
    %cst_15 = arith.constant 0.166666672 : f32
    %21 = vector.broadcast %cst_15 : f32 to vector<1x8x16xf32>
    %22 = arith.mulf %20, %21 : vector<1x8x16xf32>
    "tpu.trace_start"() <{level = 10 : i32, message = "nmc,ncw->nmw"}> : () -> ()
    %cst_16 = arith.constant dense<0.000000e+00> : vector<1x8x16xf32>
    %23 = tpu.matmul %8, %6, %cst_16 {dimension_numbers = #tpu.dot_dimension_numbers<[2], [1], [1], [2], [0, 0, 0, 1, 1, 2], [0], [0]>} : vector<1x8x4xf32>, vector<1x4x16xf32>, vector<1x8x16xf32> -> vector<1x8x16xf32>
    "tpu.trace_stop"() : () -> ()
    %24 = vector.broadcast %10 : vector<1x8x1xf32> to vector<1x8x16xf32>
    %25 = arith.addf %23, %24 : vector<1x8x16xf32>
    %cst_17 = arith.constant 3.000000e+00 : f32
    %26 = vector.broadcast %cst_17 : f32 to vector<1x8x16xf32>
    %27 = arith.addf %25, %26 : vector<1x8x16xf32>
    %cst_18 = arith.constant 0.000000e+00 : f32
    %cst_19 = arith.constant 6.000000e+00 : f32
    %28 = vector.broadcast %cst_18 : f32 to vector<1x8x16xf32>
    %29 = arith.maximumf %28, %27 : vector<1x8x16xf32>
    %30 = vector.broadcast %cst_19 : f32 to vector<1x8x16xf32>
    %31 = arith.minimumf %30, %29 : vector<1x8x16xf32>
    %32 = arith.mulf %25, %31 : vector<1x8x16xf32>
    %cst_20 = arith.constant 0.166666672 : f32
    %33 = vector.broadcast %cst_20 : f32 to vector<1x8x16xf32>
    %34 = arith.mulf %32, %33 : vector<1x8x16xf32>
    %c0_21 = arith.constant 0 : index
    %c0_22 = arith.constant 0 : index
    %35 = vector.load %arg4[%c0_21, %c0_22] : memref<4x8xf32, #tpu.memory_space<vmem>>, vector<4x8xf32>
    %36 = vector.shape_cast %35 : vector<4x8xf32> to vector<1x4x8xf32>
    %c0_23 = arith.constant 0 : index
    %c0_24 = arith.constant 0 : index
    %37 = vector.load %arg6[%c0_23, %c0_24] : memref<4x8xf32, #tpu.memory_space<vmem>>, vector<4x8xf32>
    %38 = vector.shape_cast %37 : vector<4x8xf32> to vector<1x4x8xf32>
    "tpu.trace_start"() <{level = 10 : i32, message = "ncm,nmh->nch"}> : () -> ()
    %cst_25 = arith.constant dense<0.000000e+00> : vector<1x4x16xf32>
    %39 = tpu.matmul %36, %22, %cst_25 {dimension_numbers = #tpu.dot_dimension_numbers<[2], [1], [1], [2], [0, 0, 0, 1, 1, 2], [0], [0]>} : vector<1x4x8xf32>, vector<1x8x16xf32>, vector<1x4x16xf32> -> vector<1x4x16xf32>
    "tpu.trace_stop"() : () -> ()
    %c0_26 = arith.constant 0 : index
    %c0_27 = arith.constant 0 : index
    %40 = vector.load %arg5[%c0_26, %c0_27] : memref<4x1xf32, #tpu.memory_space<vmem>>, vector<4x1xf32>
    %41 = vector.shape_cast %40 : vector<4x1xf32> to vector<1x4x1xf32>
    %42 = vector.broadcast %41 : vector<1x4x1xf32> to vector<1x4x16xf32>
    %43 = arith.addf %39, %42 : vector<1x4x16xf32>
    %44 = arith.negf %43 : vector<1x4x16xf32>
    %45 = math.exp %44 : vector<1x4x16xf32>
    %cst_28 = arith.constant 1.000000e+00 : f32
    %46 = vector.broadcast %cst_28 : f32 to vector<1x4x16xf32>
    %47 = arith.addf %46, %45 : vector<1x4x16xf32>
    %48 = arith.divf %46, %47 : vector<1x4x16xf32>
    "tpu.trace_start"() <{level = 10 : i32, message = "ncm,nmw->ncw"}> : () -> ()
    %cst_29 = arith.constant dense<0.000000e+00> : vector<1x4x16xf32>
    %49 = tpu.matmul %38, %34, %cst_29 {dimension_numbers = #tpu.dot_dimension_numbers<[2], [1], [1], [2], [0, 0, 0, 1, 1, 2], [0], [0]>} : vector<1x4x8xf32>, vector<1x8x16xf32>, vector<1x4x16xf32> -> vector<1x4x16xf32>
    "tpu.trace_stop"() : () -> ()
    %c0_30 = arith.constant 0 : index
    %c0_31 = arith.constant 0 : index
    %50 = vector.load %arg7[%c0_30, %c0_31] : memref<4x1xf32, #tpu.memory_space<vmem>>, vector<4x1xf32>
    %51 = vector.shape_cast %50 : vector<4x1xf32> to vector<1x4x1xf32>
    %52 = vector.broadcast %51 : vector<1x4x1xf32> to vector<1x4x16xf32>
    %53 = arith.addf %49, %52 : vector<1x4x16xf32>
    %54 = arith.negf %53 : vector<1x4x16xf32>
    %55 = math.exp %54 : vector<1x4x16xf32>
    %cst_32 = arith.constant 1.000000e+00 : f32
    %56 = vector.broadcast %cst_32 : f32 to vector<1x4x16xf32>
    %57 = arith.addf %56, %55 : vector<1x4x16xf32>
    %58 = arith.divf %56, %57 : vector<1x4x16xf32>
    %c0_33 = arith.constant 0 : index
    %c0_34 = arith.constant 0 : index
    %59 = vector.load %arg10[%c0_33, %c0_34] : memref<16x256xf32, #tpu.memory_space<vmem>>, vector<16x256xf32>
    %60 = vector.shape_cast %59 : vector<16x256xf32> to vector<1x16x256xf32>
    %c0_35 = arith.constant 0 : index
    %c0_36 = arith.constant 0 : index
    %61 = vector.load %arg11[%c0_35, %c0_36] : memref<16x256xf32, #tpu.memory_space<vmem>>, vector<16x256xf32>
    %62 = vector.shape_cast %61 : vector<16x256xf32> to vector<1x16x256xf32>
    "tpu.trace_start"() <{level = 10 : i32, message = "nch,nhk->nck"}> : () -> ()
    %cst_37 = arith.constant dense<0.000000e+00> : vector<1x4x256xf32>
    %63 = tpu.matmul %48, %60, %cst_37 {dimension_numbers = #tpu.dot_dimension_numbers<[2], [1], [1], [2], [0, 0, 0, 1, 1, 2], [0], [0]>} : vector<1x4x16xf32>, vector<1x16x256xf32>, vector<1x4x256xf32> -> vector<1x4x256xf32>
    "tpu.trace_stop"() : () -> ()
    "tpu.trace_start"() <{level = 10 : i32, message = "ncw,nwk->nck"}> : () -> ()
    %cst_38 = arith.constant dense<0.000000e+00> : vector<1x4x256xf32>
    %64 = tpu.matmul %58, %62, %cst_38 {dimension_numbers = #tpu.dot_dimension_numbers<[2], [1], [1], [2], [0, 0, 0, 1, 1, 2], [0], [0]>} : vector<1x4x16xf32>, vector<1x16x256xf32>, vector<1x4x256xf32> -> vector<1x4x256xf32>
    "tpu.trace_stop"() : () -> ()
    %65 = arith.mulf %0, %63 : vector<1x4x256xf32>
    %66 = arith.mulf %65, %64 : vector<1x4x256xf32>
    %c0_39 = arith.constant 0 : index
    %c0_40 = arith.constant 0 : index
    %c0_41 = arith.constant 0 : index
    %67 = vector.load %arg12[%c0_39, %c0_40, %c0_41] : memref<1x4x256xf32, #tpu.memory_space<vmem>>, vector<1x4x256xf32>
    tpu.vector_store %arg12[%c0_39, %c0_40, %c0_41], %66 {strides = array<i32>} : memref<1x4x256xf32, #tpu.memory_space<vmem>>, vector<1x4x256xf32>,
    return
  }
  func.func @transform_0(%arg0: i32) -> (i32, i32, i32) {
    %c0_i32 = arith.constant 0 : i32
    %c0_i32_0 = arith.constant 0 : i32
    %c0_i32_1 = arith.constant 0 : i32
    return %arg0, %c0_i32, %c0_i32_0 : i32, i32, i32
  }
  func.func @transform_1(%arg0: i32) -> (i32, i32) {
    %c0_i32 = arith.constant 0 : i32
    %c0_i32_0 = arith.constant 0 : i32
    %c0_i32_1 = arith.constant 0 : i32
    return %c0_i32, %c0_i32_0 : i32, i32
  }
  func.func @transform_2(%arg0: i32) -> (i32, i32) {
    %c0_i32 = arith.constant 0 : i32
    %c0_i32_0 = arith.constant 0 : i32
    %c0_i32_1 = arith.constant 0 : i32
    return %c0_i32, %c0_i32_0 : i32, i32
  }
  func.func @transform_3(%arg0: i32) -> (i32, i32) {
    %c0_i32 = arith.constant 0 : i32
    %c0_i32_0 = arith.constant 0 : i32
    %c0_i32_1 = arith.constant 0 : i32
    return %c0_i32, %c0_i32_0 : i32, i32
  }
  func.func @transform_4(%arg0: i32) -> (i32, i32) {
    %c0_i32 = arith.constant 0 : i32
    %c0_i32_0 = arith.constant 0 : i32
    %c0_i32_1 = arith.constant 0 : i32
    return %c0_i32, %c0_i32_0 : i32, i32
  }
  func.func @transform_5(%arg0: i32) -> (i32, i32) {
    %c0_i32 = arith.constant 0 : i32
    %c0_i32_0 = arith.constant 0 : i32
    %c0_i32_1 = arith.constant 0 : i32
    return %c0_i32, %c0_i32_0 : i32, i32
  }
  func.func @transform_6(%arg0: i32) -> (i32, i32) {
    %c0_i32 = arith.constant 0 : i32
    %c0_i32_0 = arith.constant 0 : i32
    %c0_i32_1 = arith.constant 0 : i32
    return %c0_i32, %c0_i32_0 : i32, i32
  }
  func.func @transform_7(%arg0: i32) -> (i32, i32) {
    %c0_i32 = arith.constant 0 : i32
    %c0_i32_0 = arith.constant 0 : i32
    %c0_i32_1 = arith.constant 0 : i32
    return %c0_i32, %c0_i32_0 : i32, i32
  }
  func.func @transform_8(%arg0: i32) -> (i32, i32) {
    %c0_i32 = arith.constant 0 : i32
    %c0_i32_0 = arith.constant 0 : i32
    %c0_i32_1 = arith.constant 0 : i32
    return %c0_i32, %c0_i32_0 : i32, i32
  }
  func.func @transform_9(%arg0: i32) -> (i32, i32) {
    %c0_i32 = arith.constant 0 : i32
    %c0_i32_0 = arith.constant 0 : i32
    %c0_i32_1 = arith.constant 0 : i32
    return %c0_i32, %c0_i32_0 : i32, i32
  }
  func.func @transform_10(%arg0: i32) -> (i32, i32) {
    %c0_i32 = arith.constant 0 : i32
    %c0_i32_0 = arith.constant 0 : i32
    %c0_i32_1 = arith.constant 0 : i32
    return %c0_i32, %c0_i32_0 : i32, i32
  }
  func.func @transform_11(%arg0: i32) -> (i32, i32, i32) {
    %c0_i32 = arith.constant 0 : i32
    %c0_i32_0 = arith.constant 0 : i32
    %c0_i32_1 = arith.constant 0 : i32
    return %arg0, %c0_i32, %c0_i32_0 : i32, i32, i32
  }
}

</mosaic_0001>

<bundles_post_ra>
// kernel: tpu_custom_call.1
= control target key start
LH: loop header
LB: loop body
LE: loop exit
PB: predicated region body
PF: predicated region fallthrough
CT: control target
= control target key end

     0   :  { %16 = vsyncpa [#allocation3], 0  ;;  %s1814_s0 = inlined_call_operand.vmem [shape: f32[2,4,256], index: 0, kind: input, shape index: {}]   ;;  %s1815_s1 = inlined_call_operand.vmem [shape: f32[8,4], index: 1, kind: input, shape index: {}]   ;;  %s1816_s2 = inlined_call_operand.vmem [shape: f32[8,1], index: 2, kind: input, shape index: {}]   ;;  %s1817_s3 = inlined_call_operand.vmem [shape: f32[4,8], index: 3, kind: input, shape index: {}]   ;;  %s1818_s4 = inlined_call_operand.vmem [shape: f32[4,1], index: 4, kind: input, shape index: {}]   ;;  %s1819_s5 = inlined_call_operand.vmem [shape: f32[4,8], index: 5, kind: input, shape index: {}]   ;;  %s1820_s6 = inlined_call_operand.vmem [shape: f32[4,1], index: 6, kind: input, shape index: {}]   ;;  %s1821_s7 = inlined_call_operand.vmem [shape: f32[256,16], index: 7, kind: input, shape index: {}]   ;;  %s1822_s8 = inlined_call_operand.vmem [shape: f32[256,16], index: 8, kind: input, shape index: {}]   ;;  %s1823_s9 = inlined_call_operand.vmem [shape: f32[16,256], index: 9, kind: input, shape index: {}]   ;;  %s1824_s10 = inlined_call_operand.vmem [shape: f32[16,256], index: 10, kind: input, shape index: {}]   ;;  %s1825_s11 = inlined_call_operand.hbm [shape: f32[2,4,256], index: 11, kind: output, shape index: {}]  }
   0x1   :  { %18 = vsyncpa [#allocation3 + $0x1], 0  ;;  %s1477_s17 = smov 0   ;;  %s1479_s18 = smov 0  }
   0x2   :  { %s1481_s19 = smov 0   ;;  %s1483_s20 = smov 0  }
   0x3 LB: > { %1827 = sst [smem:[#allocation5_spill]] %s1407_s19  ;;  %s1498_s21 = sadd.s32 4294967295, %s1411_s20   ;;  %s1411_s20 = sphi %s1483_s20, %s1835_s20   ;;  %s1407_s19 = sphi %s1481_s19, %s1832_s19   ;;  %s1403_s18 = sphi %s1479_s18, %s1834_s18   ;;  %s1399_s17 = sphi %s1477_s17, %s1833_s17  }
   0x4   : > { %s1176_s22 = sadd.s32 4294967294, %s1411_s20   ;;  %s1502_s23 = sadd.s32 1, %s1411_s20  }
   0x5   : > { %s267_s24 = sadd.s32 1, %s1407_s19  ;;  %s264_s25 = ssub.s32 %s1411_s20, %s1502_s23 }
   0x6   : > { %p277_p0 = scmp.ne.s32.totalorder %s1407_s19, %s1403_s18  ;;  %p265_p1 = scmp.eq.s32.totalorder %s264_s25, 0 }
   0x7   : > { %p278_p2 = scmp.eq.s32.totalorder %s1498_s21, 1  ;;  %p283_p3 = scmp.ne.s32.totalorder %s1403_s18, %s1399_s17 }
   0x8   : > { %p284_p4 = scmp.eq.s32.totalorder %s1176_s22, 1  ;;  %p1179_p7 = scmp.ge.s32.totalorder %s1411_s20, 1 }
   0x9   : > { %s1513_s26 = scalar_select %p265_p1, %s1407_s19, %s267_s24  }
   0xa   : > { %p1515_p5 = por %p278_p2, %p277_p0  ;;  %p1519_p6 = por %p284_p4, %p283_p3 }
   0xb   : > { %1828 = sst [smem:[#allocation6_spill]] %s1513_s26  ;;  %p340_p8 = scmp.lt.s32.totalorder %s1411_s20, 3 }
   0xd   : > { %p341_p9 = pnand %p1179_p7, %p340_p8 }
   0xe   : > { %p380_p10 = scmp.lt.s32.totalorder (!%p341_p9), %s1498_s21, 1  ;;  %s1199_s13 = sshll.u32 (!%p341_p9), %s1498_s21, 7 }
   0xf   : > { %344 = sbr.rel (%p341_p9) target bundleno = 900 (0x384), region = 64  ;;  %s1416_s26 = smov (!%p341_p9), [#allocation2]  }
  0x14   : > { %v417_v0 = vld [vmem:[%s1821_s7 + $0xf8] sm:$0xff]  ;;  %v416_v4 = vld [vmem:[%s1821_s7 + $0xf0] sm:$0xff]  ;;  %v415_v8 = vld [vmem:[%s1821_s7 + $0xe8] sm:$0xff]  ;;  %s1637_s12 = scalar_select %p380_p10, %s1498_s21, 1  ;;  %vm1414_vm0 = vmmov 0   ;;  %vm604_vm1 = vcmask 1043456  }
  0x15   : > { %v449_v1 = vld [vmem:[%s1822_s8 + $0xf8] sm:$0xff]  ;;  %1200 = vmatprep.subr.mxu0 %v417_v0  ;;  %v448_v5 = vld [vmem:[%s1822_s8 + $0xf0] sm:$0xff]  ;;  %v447_v9 = vld [vmem:[%s1822_s8 + $0xe8] sm:$0xff]  ;;  %vm600_vm2 = vcmask 31744   ;;  %vm769_vm3 = vcmask 64512   ;;  %vm942_vm4 = vcmask 130048  }
  0x16   : > { %v401_v2 = vld [vmem:[%s1821_s7 + $0x78] sm:$0xff]  ;;  %1235 = vmatprep.subr.mxu1 %v449_v1  ;;  %v400_v6 = vld [vmem:[%s1821_s7 + $0x70] sm:$0xff]  ;;  %v399_v10 = vld [vmem:[%s1821_s7 + $0x68] sm:$0xff]  ;;  %s1198_s25 = sshll.u32 %s1637_s12, 3  ;;  %s1115_s12 = scalar_lea.hbm %s1825_s11, %s1199_s13 }
  0x17   : > { %v433_v3 = vld [vmem:[%s1822_s8 + $0x78] sm:$0xff]  ;;  %1201 = vmatpush3.msra.mxu0 %v401_v2  ;;  %v432_v7 = vld [vmem:[%s1822_s8 + $0x70] sm:$0xff]  ;;  %v431_v11 = vld [vmem:[%s1822_s8 + $0x68] sm:$0xff]  ;;  %s384_s19 = scalar_lea.vmem %s1814_s0, %s1198_s25  ;;  %v1413_v2 = vmov 0.0   ;;  %s1355_s21 = sshll.u32 %s1416_s26, 4  ;;  %s1356_s21 = int_to_ptr.vmem [resolvable:$false] %s1355_s21 }
  0x18   : > { %1236 = vmatpush3.msra.mxu1 %v433_v3  ;;  %1202 = vmatprep.subr.mxu0 %v416_v4  ;;  %v414_v12 = vld [vmem:[%s1821_s7 + $0xe0] sm:$0xff]  ;;  %v413_v16 = vld [vmem:[%s1821_s7 + $0xd8] sm:$0xff]  ;;  %v412_v20 = vld [vmem:[%s1821_s7 + $0xd0] sm:$0xff]  ;;  %v1415_v4 = vmov 0   ;;  %s1357_s25 = scalar_lea.vmem %s1356_s21, 256 }
  0x19   : > { %1237 = vmatprep.subr.mxu1 %v448_v5  ;;  %1203 = vmatpush3.msra.mxu0 %v400_v6  ;;  %v446_v13 = vld [vmem:[%s1822_s8 + $0xe0] sm:$0xff]  ;;  %v445_v17 = vld [vmem:[%s1822_s8 + $0xd8] sm:$0xff]  ;;  %v444_v21 = vld [vmem:[%s1822_s8 + $0xd0] sm:$0xff] }
  0x1a   : > { %1238 = vmatpush3.msra.mxu1 %v432_v7  ;;  %1204 = vmatprep.subr.mxu0 %v415_v8  ;;  %v398_v14 = vld [vmem:[%s1821_s7 + $0x60] sm:$0xff]  ;;  %v397_v18 = vld [vmem:[%s1821_s7 + $0x58] sm:$0xff]  ;;  %v396_v22 = vld [vmem:[%s1821_s7 + $0x50] sm:$0xff] }
  0x1b   : > { %1239 = vmatprep.subr.mxu1 %v447_v9  ;;  %v430_v15 = vld [vmem:[%s1822_s8 + $0x60] sm:$0xff]  ;;  %1205 = vmatpush3.msra.mxu0 %v399_v10  ;;  %v429_v19 = vld [vmem:[%s1822_s8 + $0x58] sm:$0xff]  ;;  %v428_v23 = vld [vmem:[%s1822_s8 + $0x50] sm:$0xff] }
  0x1c   : > { %1240 = vmatpush3.msra.mxu1 %v431_v11  ;;  %1206 = vmatprep.subr.mxu0 %v414_v12  ;;  %v411_v24 = vld [vmem:[%s1821_s7 + $0xc8] sm:$0xff]  ;;  %v410_v28 = vld [vmem:[%s1821_s7 + $0xc0] sm:$0xff]  ;;  %v409_v32 = vld [vmem:[%s1821_s7 + $0xb8] sm:$0xff] }
  0x1d   : > { %1241 = vmatprep.subr.mxu1 %v446_v13  ;;  %1207 = vmatpush3.msra.mxu0 %v398_v14  ;;  %v443_v25 = vld [vmem:[%s1822_s8 + $0xc8] sm:$0xff]  ;;  %v442_v29 = vld [vmem:[%s1822_s8 + $0xc0] sm:$0xff]  ;;  %v441_v33 = vld [vmem:[%s1822_s8 + $0xb8] sm:$0xff] }
  0x1e   : > { %1242 = vmatpush3.msra.mxu1 %v430_v15  ;;  %1208 = vmatprep.subr.mxu0 %v413_v16  ;;  %v395_v26 = vld [vmem:[%s1821_s7 + $0x48] sm:$0xff]  ;;  %v394_v30 = vld [vmem:[%s1821_s7 + $0x40] sm:$0xff]  ;;  %v393_v34 = vld [vmem:[%s1821_s7 + $0x38] sm:$0xff] }
  0x1f   : > { %1243 = vmatprep.subr.mxu1 %v445_v17  ;;  %1209 = vmatpush3.msra.mxu0 %v397_v18  ;;  %v427_v27 = vld [vmem:[%s1822_s8 + $0x48] sm:$0xff]  ;;  %v426_v31 = vld [vmem:[%s1822_s8 + $0x40] sm:$0xff]  ;;  %v425_v35 = vld [vmem:[%s1822_s8 + $0x38] sm:$0xff] }
  0x20   : > { %1244 = vmatpush3.msra.mxu1 %v429_v19  ;;  %1210 = vmatprep.subr.mxu0 %v412_v20  ;;  %v408_v36 = vld [vmem:[%s1821_s7 + $0xb0] sm:$0xff]  ;;  %v407_v40 = vld [vmem:[%s1821_s7 + $0xa8] sm:$0xff]  ;;  %v406_v44 = vld [vmem:[%s1821_s7 + $0xa0] sm:$0xff] }
  0x21   : > { %1245 = vmatprep.subr.mxu1 %v444_v21  ;;  %1211 = vmatpush3.msra.mxu0 %v396_v22  ;;  %v440_v37 = vld [vmem:[%s1822_s8 + $0xb0] sm:$0xff]  ;;  %v439_v41 = vld [vmem:[%s1822_s8 + $0xa8] sm:$0xff]  ;;  %v438_v45 = vld [vmem:[%s1822_s8 + $0xa0] sm:$0xff] }
  0x22   : > { %1246 = vmatpush3.msra.mxu1 %v428_v23  ;;  %1212 = vmatprep.subr.mxu0 %v411_v24  ;;  %v392_v38 = vld [vmem:[%s1821_s7 + $0x30] sm:$0xff]  ;;  %v391_v42 = vld [vmem:[%s1821_s7 + $0x28] sm:$0xff]  ;;  %v390_v46 = vld [vmem:[%s1821_s7 + $0x20] sm:$0xff] }
  0x23   : > { %1247 = vmatprep.subr.mxu1 %v443_v25  ;;  %1213 = vmatpush3.msra.mxu0 %v395_v26  ;;  %v424_v39 = vld [vmem:[%s1822_s8 + $0x30] sm:$0xff]  ;;  %v423_v43 = vld [vmem:[%s1822_s8 + $0x28] sm:$0xff]  ;;  %v422_v47 = vld [vmem:[%s1822_s8 + $0x20] sm:$0xff] }
  0x24   : > { %1248 = vmatpush3.msra.mxu1 %v427_v27  ;;  %1214 = vmatprep.subr.mxu0 %v410_v28  ;;  %v405_v48 = vld [vmem:[%s1821_s7 + $0x98] sm:$0xff]  ;;  %v404_v52 = vld [vmem:[%s1821_s7 + $0x90] sm:$0xff]  ;;  %v1703_v56 = vld [vmem:[%s384_s19] sm:$0xff]  ;;  %s377_s19 = sand.u32 1, %s1403_s18  }
  0x25   : > { %1249 = vmatprep.subr.mxu1 %v442_v29  ;;  %1215 = vmatpush3.msra.mxu0 %v394_v30  ;;  %v437_v49 = vld [vmem:[%s1822_s8 + $0x98] sm:$0xff]  ;;  %v436_v53 = vld [vmem:[%s1822_s8 + $0x90] sm:$0xff]  ;;  %v403_v57 = vld [vmem:[%s1821_s7 + $0x88] sm:$0xff]  ;;  %v451_v63 = vcombine.high %v1703_v56, %v1703_v56  ;;  %s1180_s30 = sshll.u32 %s377_s19, 3  ;;  %s1103_s24 = scalar_lea.sflag [#allocation3], %s377_s19 }
  0x26   : > { %1250 = vmatpush3.msra.mxu1 %v426_v31  ;;  %1216 = vmatprep.subr.mxu0 %v409_v32  ;;  %v389_v50 = vld [vmem:[%s1821_s7 + $0x18] sm:$0xff]  ;;  %v388_v54 = vld [vmem:[%s1821_s7 + $0x10] sm:$0xff]  ;;  %v435_v58 = vld [vmem:[%s1822_s8 + $0x88] sm:$0xff]  ;;  %s379_s14 = scalar_lea.vmem [#allocation2], %s1180_s30 }
  0x27   : > { %1251 = vmatprep.subr.mxu1 %v441_v33  ;;  %1217 = vmatpush3.msra.mxu0 %v393_v34  ;;  %v421_v51 = vld [vmem:[%s1822_s8 + $0x18] sm:$0xff]  ;;  %v420_v55 = vld [vmem:[%s1822_s8 + $0x10] sm:$0xff]  ;;  %v387_v59 = vld [vmem:[%s1821_s7 + $0x8] sm:$0xff]  ;;  %s1117_s15 = sshll.u32 %s379_s14, 4  ;;  %s1118_s15 = int_to_ptr.vmem [resolvable:$true] %s1117_s15 }
  0x28   : > { %1252 = vmatpush3.msra.mxu1 %v425_v35  ;;  %1218 = vmatprep.subr.mxu0 %v408_v36  ;;  %v419_v60 = vld [vmem:[%s1822_s8 + $0x8] sm:$0xff]  ;;  %v402_v61 = vld [vmem:[%s1821_s7 + $0x80] sm:$0xff]  ;;  %v937_v33 = vld [vmem:[%s1823_s9 + $0x18] sm:$0xff]  ;;  %s1351_s29 = scalar_lea.vmem %s1118_s15, 128  ;;  %p1358_p0 = scmp.lt.s32.totalorder %s1118_s15, %s1356_s21 }
  0x29   : > { %1253 = vmatprep.subr.mxu1 %v440_v37  ;;  %1219 = vmatpush3.msra.mxu0 %v392_v38  ;;  %v434_v62 = vld [vmem:[%s1822_s8 + $0x80] sm:$0xff]  ;;  %v936_v34 = vld [vmem:[%s1823_s9 + $0x10] sm:$0xff]  ;;  %v935_v35 = vld [vmem:[%s1823_s9 + $0x8] sm:$0xff]  ;;  %p1352_p11 = scmp.ne.s32.totalorder %s1118_s15, %s1351_s29  ;;  %p1359_p1 = scmp.lt.s32.totalorder %s1357_s25, %s1351_s29 }
  0x2a   : > { %1254 = vmatpush3.msra.mxu1 %v424_v39  ;;  %1220 = vmatprep.subr.mxu0 %v407_v40  ;;  %v386_v0 = vld [vmem:[%s1821_s7] sm:$0xff]  ;;  %v941_v36 = vld [vmem:[%s1824_s10 + $0x18] sm:$0xff]  ;;  %v940_v38 = vld [vmem:[%s1824_s10 + $0x10] sm:$0xff] }
  0x2b   : > { %1255 = vmatprep.subr.mxu1 %v439_v41  ;;  %1221 = vmatpush3.msra.mxu0 %v391_v42  ;;  %v418_v1 = vld [vmem:[%s1822_s8] sm:$0xff]  ;;  %v939_v39 = vld [vmem:[%s1824_s10 + $0x8] sm:$0xff]  ;;  %p1353_p12 = pnand %p1352_p11, %p1515_p5  ;;  %p1360_p2 = por %p1359_p1, %p1358_p0 }
  0x2c   : > { %1256 = vmatpush3.msra.mxu1 %v423_v43  ;;  %1222 = vmatprep.subr.mxu0 %v406_v44  ;;  %v594_v3 = vld [vmem:[%s1816_s2] sm:$0xff] }
  0x2d   : > { %1257 = vmatprep.subr.mxu1 %v438_v45  ;;  %1223 = vmatpush3.msra.mxu0 %v390_v46  ;;  %v763_v5 = vld [vmem:[%s1818_s4] sm:$0xf]  ;;  %p1354_p13 = pneg %p1353_p12 }
  0x2e   : > { %1258 = vmatpush3.msra.mxu1 %v422_v47  ;;  %1224 = vmatprep.subr.mxu0 %v405_v48  ;;  %v593_v12 = vld [vmem:[%s1815_s1] sm:$0xff] }
  0x2f   : > { %1259 = vmatprep.subr.mxu1 %v437_v49  ;;  %1225 = vmatpush3.msra.mxu0 %v389_v50  ;;  %v849_v13 = vld [vmem:[%s1820_s6] sm:$0xf]  ;;  %p1361_p3 = pnand %p1360_p2, %p1354_p13 }
  0x30   : > { %1260 = vmatpush3.msra.mxu1 %v421_v51  ;;  %1226 = vmatprep.subr.mxu0 %v404_v52  ;;  %v761_v29 = vld [vmem:[%s1817_s3] sm:$0xf] }
  0x31   : > { %1261 = vmatprep.subr.mxu1 %v436_v53  ;;  %1227 = vmatpush3.msra.mxu0 %v388_v54  ;;  %v762_v32 = vld [vmem:[%s1819_s5] sm:$0xf] }
  0x32   : > { %1262 = vmatpush3.msra.mxu1 %v420_v55  ;;  %1228 = vmatprep.subr.mxu0 %v403_v57  ;;  %v934_v37 = vld [vmem:[%s1823_s9] sm:$0xff] }
  0x33   : > { %1263 = vmatprep.subr.mxu1 %v435_v58  ;;  %1229 = vmatpush3.msra.mxu0 %v387_v59  ;;  %v938_v40 = vld [vmem:[%s1824_s10] sm:$0xff] }
  0x34   : > { %1264 = vmatpush3.msra.mxu1 %v419_v60  ;;  %1230 = vmatprep.subr.mxu0 %v402_v61 }
  0x35   : > { %1265 = vmatprep.subr.mxu1 %v434_v62  ;;  %1231 = vmatpush3.msra.mxu0 %v386_v0 }
  0x36   : > { %517 = vmatprep.mubr.f32.mxu0 %v451_v63  ;;  %1266 = vmatpush3.msra.mxu1 %v418_v1 }
  0x37   : > { %587 = vmatprep.mubr.f32.mxu1 %v451_v63  ;;  %518 = vmatmul.mubr.f32.vlgmr.msra.gmra.mxu0 %v1703_v56 }
  0x38   : > { %588 = vmatmul.mubr.f32.vlgmr.msra.gmra.mxu1 %v1703_v56  ;;  %1278 = vmatprep.subr.mxu0 %v1413_v2 }
  0x39   : > { %1283 = vmatprep.subr.mxu1 %v1413_v2  ;;  %1280 = vmatprep.mubr.msk.f32.mxu0 %vm1414_vm0, %v1413_v2 }
  0x3a   : > { %1285 = vmatprep.mubr.msk.f32.mxu1 %vm1414_vm0, %v1413_v2  ;;  %1340 = vset.pattern.permute.xlu0 %v1415_v4 }
  0x3b   : > { %1341 = vset.pattern.permute.xlu1 %v1415_v4  ;;  %597 = vperm.xlu0 %1340, %v594_v3  }
  0x3c   : > { %852 = vperm.xlu1 %1341, %v849_v13  }
  0x3f   : > { %766 = vperm.xlu0 %1340, %v763_v5  }
  0xb6   : > { %v598_v14 = vpop.permute.xlu0 %597 }
  0xb7   : > { %v853_v41 = vpop.permute.xlu1 %852 }
  0xba   : > { %v767_v42 = vpop.permute.xlu0 %766 }
  0xf7   : > { %v1232_v6 = vpop.f32.mrf.mxu0 }
  0xf8   : > { %v1267_v7 = vpop.f32.mrf.mxu1 }
  0xf9   : > { %v1233_v8 = vpop.f32.mrf.mxu0 }
  0xfa   : > { %v1268_v9 = vpop.f32.mrf.mxu1  ;;  %v1234_v10 = vadd.f32 %v1233_v8, %v1232_v6 }
  0xfb   : > { %v1269_v11 = vadd.f32 %v1268_v9, %v1267_v7 }
  0xfc   : > { %1279 = vmatpush3.msk.msra.mxu0 %vm604_vm1, %v1234_v10 }
  0xfd   : > { %1284 = vmatpush3.msk.msra.mxu1 %vm604_vm1, %v1269_v11  ;;  %1281 = vmatmul.mubr.msk.f32.vlgmr.msra.gmra.mxu0 %vm600_vm2, %v593_v12 }
  0xfe   : > { %1286 = vmatmul.mubr.msk.f32.vlgmr.msra.gmra.mxu1 %vm600_vm2, %v593_v12  ;;  %1288 = vmatprep.subr.mxu0 %v1413_v2 }
  0xff   : > { %1293 = vmatprep.subr.mxu1 %v1413_v2  ;;  %1290 = vmatprep.mubr.msk.f32.mxu0 %vm1414_vm0, %v1413_v2 }
 0x100   : > { %1295 = vmatprep.mubr.msk.f32.mxu1 %vm1414_vm0, %v1413_v2 }
 0x1bd   : > { %v674_v15 = vpop.f32.mrf.mxu0 }
 0x1be   : > { %v752_v16 = vpop.f32.mrf.mxu1  ;;  %v675_v17 = vadd.f32 %v674_v15, %v598_v14 }
 0x1bf   : > { %v753_v18 = vadd.f32 %v752_v16, %v598_v14  ;;  %v1282_v19 = vpop.f32.mrf.mxu0 }
 0x1c0   : > { %v1287_v20 = vpop.f32.mrf.mxu1  ;;  %v678_v21 = vadd.f32 3.0, %v675_v17 }
 0x1c1   : > { %v756_v22 = vadd.f32 3.0, %v753_v18 }
 0x1c2   : > { %v679_v23 = vmax.f32 %v678_v21, 0.0 }
 0x1c3   : > { %v757_v24 = vmax.f32 %v756_v22, 0.0 }
 0x1c4   : > { %v680_v25 = vmin.f32 %v679_v23, 6.0 }
 0x1c5   : > { %v758_v26 = vmin.f32 %v757_v24, 6.0 }
 0x1c6   : > { %v681_v27 = vmul.f32 %v680_v25, %v675_v17 }
 0x1c7   : > { %v759_v28 = vmul.f32 %v758_v26, %v753_v18 }
 0x1c8   : > { %v682_v30 = vmul.f32 0.16666667, %v681_v27 }
 0x1c9   : > { %v760_v31 = vmul.f32 0.16666667, %v759_v28 }
 0x1ca   : > { %1289 = vmatpush3.msra.mxu0 %v682_v30 }
 0x1cb   : > { %1294 = vmatpush3.msra.mxu1 %v760_v31  ;;  %1291 = vmatmul.mubr.msk.f32.vlgmr.msra.gmra.mxu0 %vm769_vm3, %v761_v29 }
 0x1cc   : > { %1296 = vmatmul.mubr.msk.f32.vlgmr.msra.gmra.mxu1 %vm769_vm3, %v762_v32  ;;  %1010 = vmatprep.mubr.f32.mxu0 %v1413_v2 }
 0x1cd   : > { %1084 = vmatprep.mubr.f32.mxu1 %v1413_v2  ;;  %974 = vmatprep.subr.mxu0 %v937_v33 }
 0x1ce   : > { %975 = vmatpush1.msra.mxu0 %v936_v34  ;;  %1048 = vmatprep.subr.mxu1 %v941_v36 }
 0x1cf   : > { %976 = vmatprep.subr.mxu0 %v935_v35  ;;  %1049 = vmatpush1.msra.mxu1 %v940_v38 }
 0x1d0   : > { %977 = vmatpush1.msra.mxu0 %v934_v37  ;;  %1050 = vmatprep.subr.mxu1 %v939_v39 }
 0x1d1   : > { %1051 = vmatpush1.msra.mxu1 %v938_v40 }
 0x28b   : > { %v839_v43 = vpop.f32.mrf.mxu0 }
 0x28c   : > { %v924_v44 = vpop.f32.mrf.mxu1  ;;  %v840_v45 = vadd.f32 %v839_v43, %v767_v42 }
 0x28d   : > { %v925_v46 = vadd.f32 %v924_v44, %v853_v41  ;;  %v1292_v47 = vpop.f32.mrf.mxu0 }
 0x28e   : > { %v1297_v48 = vpop.f32.mrf.mxu1  ;;  %v1188_v49 = vmul.f32 -1.442695, %v840_v45 }
 0x28f   : > { %v1190_v50 = vmul.f32 -1.442695, %v925_v46 }
 0x290   : > { %1343 = vpow2.f32 %v1188_v49 }
 0x291   : > { %1345 = vpow2.f32 %v1190_v50 }
 0x29d   : > { %v1344_v51 = vpop.eup %1343 }
 0x29e   : > { %v1346_v52 = vpop.eup %1345  ;;  %v846_v53 = vadd.f32 1.0, %v1344_v51 }
 0x29f   : > { %v931_v54 = vadd.f32 1.0, %v1346_v52 }
 0x2a0   : > { %1347 = vrcp.f32 %v846_v53 }
 0x2a1   : > { %1349 = vrcp.f32 %v931_v54 }
 0x2ad   : > { %v1348_v55 = vpop.eup %1347 }
 0x2ae   : > { %v1350_v57 = vpop.eup %1349  ;;  %1191 = vmatmul.mubr.msk.f32.vlgmr.msra.gmra.mxu0 %vm942_vm4, %v1348_v55 }
 0x2af   : > { %1192 = vmatmul.mubr.msk.f32.vlgmr.msra.gmra.mxu1 %vm942_vm4, %v1350_v57 }
 0x36e   : > { %v1012_v58 = vpop.f32.mrf.mxu0 }
 0x36f   : > { %v1086_v59 = vpop.f32.mrf.mxu1 }
 0x370   : > { %v1014_v60 = vpop.f32.mrf.mxu0 }
 0x371   : > { %v1093_v61 = vcombine.low %v1012_v58, %v1014_v60  ;;  %v1088_v62 = vpop.f32.mrf.mxu1 }
 0x372   : > { %v1098_v0 = vcombine.low %v1086_v59, %v1088_v62 }
 0x373   : > { %v1095_v63 = vmul.f32 %v1093_v61, %v1703_v56 }
 0x375   : > { %v1100_v1 = vmul.f32 %v1098_v0, %v1095_v63 }
 0x377   : > { %1101 = vst [vmem:[%s379_s14] sm:$0xff] %v1100_v1 }
 0x378   : > { %1364 = shalt.err (!%p1361_p3)
}
 0x379   : > { %s1365_s30 = scalar_lea.hbm %s1115_s12, 128  ;;  %s1369_s14 = scalar_lea.hbm %s1825_s11, 256 }
 0x37a   : > { %p1366_p4 = scmp.ne.s32.totalorder %s1115_s12, %s1365_s30  ;;  %p1370_p9 = scmp.lt.s32.totalorder %s1115_s12, %s1825_s11 }
 0x37b   : > { %p1371_p10 = scmp.lt.s32.totalorder %s1369_s14, %s1365_s30 }
 0x37c   : > { %p1367_p7 = pnand %p1366_p4, %p1515_p5 }
 0x37d   : > { %p1372_p11 = por %p1371_p10, %p1370_p9 }
 0x37e   : > { %p1368_p8 = pneg %p1367_p7 }
 0x380   : > { %p1373_p12 = pnand %p1372_p11, %p1368_p8 }
 0x382   : > { %1376 = shalt.err (!%p1373_p12)
}
 0x383   : > { %1298 = dma.vmem_to_hbm [thread:$0]  (%p1515_p5), %s1118_s15, 128, %s1115_s12, %s1103_s24  }
 0x384 PF: > { %p1304_p13 = scmp.ge.s32.totalorder %s1411_s20, 2  ;;  %s1129_s29 = sand.u32 1, %s1399_s17  }
 0x385   : > { %s1130_s26 = scalar_lea.sflag [#allocation3], %s1129_s29 }
 0x386   : > { %p1301_p0 = pnand %p1304_p13, %p1519_p6 }
 0x388   : > { %p1302_p1 = pneg %p1301_p0 }
 0x38a   : > { %1394 = dma.done.wait (%p1302_p1), %s1130_s26, 128  }
 0x38b   : > { %1396 = vsyncadd (%p1302_p1), %s1130_s26, 4294967168  ;;  %s1831_s21 = sld [smem:[#allocation5_spill]]  ;;  %p21_p2 = scmp.ge.s32.totalorder %s1502_s23, 4  }
 0x38c   : > { %s1832_s19 = sld [smem:[#allocation6_spill]]  ;;  %s1833_s17 = smov %s1403_s18 }
 0x38d   : > { %s1835_s20 = smov %s1502_s23  ;;  %23 = sbr.rel (!%p21_p2) target bundleno = 3 (0x3), region = 99 }
 0x391   : > { %s1834_s18 = smov %s1831_s21 }
 0x392   :  { %1135 = vsyncpa [#allocation3], 1 }
 0x393   :  { %1137 = vsyncpa [#allocation3 + $0x1], 1 }

</bundles_post_ra>
